<compile_context>
chip_gen: v5e
topology: v5e:2x2
jax: 0.10.0
libtpu: 0.0.40
codegen_flags: <defaults>
</compile_context>

<pallas_src>
import functools

import numpy as np
import jax
import jax.numpy as jnp
from jax.experimental import pallas as pl
from jax.experimental.pallas import tpu as pltpu

LANE = 128
SUBLANE = 8


def _round_up(n, m):
    return ((n + m - 1) // m) * m


# --------------------------------------------------------------------------
# Kernel
# --------------------------------------------------------------------------
def dueling_q_kernel(x_ref,
                     w1_ref, b1_ref, w2_ref, b2_ref,        # feature layer
                     wva1_ref, bva1_ref,                    # fused value|adv layer-1
                     whead_ref, bhead_ref,                  # fused block-diag head
                     out_ref,
                     *, action_size, compute_dtype):
    cd = compute_dtype

    # feature_layer: Linear -> ReLU -> Linear -> ReLU (bf16 matmuls, f32 acc).
    x = x_ref[...].astype(cd)
    h = jnp.dot(x, w1_ref[...], preferred_element_type=jnp.float32) + b1_ref[...]
    h = jnp.maximum(h, 0.0)
    h = jnp.dot(h.astype(cd), w2_ref[...], preferred_element_type=jnp.float32) + b2_ref[...]
    h = jnp.maximum(h, 0.0)

    # Fused first layers of the value & advantage streams (zero-padded halves):
    #   columns [0, half_pad)          -> value-stream hidden
    #   columns [half_pad, 2*half_pad) -> advantage-stream hidden
    va = jnp.dot(h.astype(cd), wva1_ref[...], preferred_element_type=jnp.float32) + bva1_ref[...]
    va = jnp.maximum(va, 0.0)

    # Fused block-diagonal second layers -> ONE lane-dense (TB, 128) matmul:
    #   head[:, 0:action)  = advantages A
    #   head[:, action]    = value V
    #   head[:, action+1:] = exact zeros (zero-padded weights / bias)
    head = jnp.dot(va.astype(cd), whead_ref[...], preferred_element_type=jnp.float32) + bhead_ref[...]

    v = head[:, action_size:action_size + 1]
    # Padded columns are exactly zero, so sum(head) = sum(A) + V.
    a_mean = (jnp.sum(head, axis=1, keepdims=True) - v) * (1.0 / float(action_size))

    # Full-width, lane-dense store (only cols [0, action_size) are valid; the
    # wrapper slices them out).  bf16 out halves the dominant HBM writeback.
    out_ref[...] = (head + (v - a_mean)).astype(out_ref.dtype)


# --------------------------------------------------------------------------
# One-time parameter packing
# --------------------------------------------------------------------------
def pack_params(params, action_size, compute_dtype=jnp.bfloat16, lane_pad=LANE):
    """Fuse the two streams, zero-pad hidden/half to a lane multiple, zero-pad
    the head to 128 output lanes, and cast matmul weights to bf16 (biases f32)."""
    in_size, hidden = params["w1"].shape
    half = hidden // 2

    h_pad = _round_up(hidden, lane_pad)
    half_pad = _round_up(half, lane_pad)
    va_width = 2 * half_pad
    np_out = _round_up(action_size + 1, LANE)
    f32 = jnp.float32

    w1 = jnp.zeros((in_size, h_pad), f32).at[:, :hidden].set(params["w1"])
    b1 = jnp.zeros((1, h_pad), f32).at[:, :hidden].set(params["b1"])
    w2 = jnp.zeros((h_pad, h_pad), f32).at[:hidden, :hidden].set(params["w2"])
    b2 = jnp.zeros((1, h_pad), f32).at[:, :hidden].set(params["b2"])

    wva1 = jnp.zeros((h_pad, va_width), f32)
    wva1 = wva1.at[:hidden, :half].set(params["wv1"])
    wva1 = wva1.at[:hidden, half_pad:half_pad + half].set(params["wa1"])
    bva1 = jnp.zeros((1, va_width), f32)
    bva1 = bva1.at[:, :half].set(params["bv1"])
    bva1 = bva1.at[:, half_pad:half_pad + half].set(params["ba1"])

    whead = jnp.zeros((va_width, np_out), f32)
    whead = whead.at[half_pad:half_pad + half, :action_size].set(params["wa2"])  # adv rows
    whead = whead.at[:half, action_size].set(params["wv2"][:, 0])                # value rows
    bhead = jnp.zeros((1, np_out), f32)
    bhead = bhead.at[0, :action_size].set(params["ba2"][0])
    bhead = bhead.at[0, action_size].set(params["bv2"][0, 0])

    cd = compute_dtype
    return dict(
        w1=w1.astype(cd), b1=b1,
        w2=w2.astype(cd), b2=b2,
        wva1=wva1.astype(cd), bva1=bva1,
        whead=whead.astype(cd), bhead=bhead,
        action_size=action_size, compute_dtype=cd,
    )


# --------------------------------------------------------------------------
# Wrapper
# --------------------------------------------------------------------------
def _choose_batch_tile(B, batch_tile, min_grid_steps):
    """tb is a multiple of 8, padding waste is <= 7 rows per step, and (when
    the batch is big enough) there are >= min_grid_steps grid steps so the
    "parallel" batch axis shards across v7x's two TensorCores."""
    n = max(1, pl.cdiv(B, max(SUBLANE, batch_tile)))
    if n < min_grid_steps and _round_up(B, SUBLANE) >= min_grid_steps * SUBLANE:
        n = min_grid_steps
    tb = _round_up(pl.cdiv(B, n), SUBLANE)
    b_pad = _round_up(B, tb)
    return tb, b_pad


def dueling_q_forward(x, packed, *, batch_tile=1024, min_grid_steps=2,
                      out_dtype=jnp.bfloat16):
    """x: (B, input_size) f32. Returns q_values (B, action_size) f32."""
    B, in_size = x.shape
    action_size = packed["action_size"]
    h_pad = packed["w1"].shape[1]
    va_width = packed["wva1"].shape[1]
    np_out = packed["whead"].shape[1]

    tb, b_pad = _choose_batch_tile(B, batch_tile, min_grid_steps)
    if b_pad != B:
        x = jnp.pad(x, ((0, b_pad - B), (0, 0)))
    grid = (b_pad // tb,)

    weights = (packed["w1"], packed["b1"], packed["w2"], packed["b2"],
               packed["wva1"], packed["bva1"], packed["whead"], packed["bhead"])

    kernel = functools.partial(dueling_q_kernel,
                               action_size=action_size,
                               compute_dtype=packed["compute_dtype"])

    out_itemsize = np.dtype(out_dtype).itemsize
    weight_bytes = sum(int(w.size) * w.dtype.itemsize for w in weights)

    # Advisory cost estimate (helps XLA schedule/overlap this call in a jit).
    flops = 2 * b_pad * (in_size * h_pad + h_pad * h_pad
                         + h_pad * va_width + va_width * np_out)
    bytes_accessed = (b_pad * in_size * x.dtype.itemsize + weight_bytes
                      + b_pad * np_out * out_itemsize)
    cost = pl.CostEstimate(flops=flops, transcendentals=0,
                           bytes_accessed=bytes_accessed)

    # Scoped-VMEM budget: resident weights + double-buffered x/out tiles +
    # f32/bf16 intermediates, with headroom; never below the 32 MiB default.
    tile_bytes = 2 * tb * (in_size * 4 + np_out * out_itemsize)
    interm_bytes = tb * (h_pad + va_width + np_out) * 6
    vmem_limit = max(32 << 20,
                     int(1.25 * (weight_bytes + tile_bytes + interm_bytes)) + (4 << 20))
    vmem_limit = min(vmem_limit, 100 << 20)

    cparams = pltpu.CompilerParams(
        dimension_semantics=("parallel",),   # batch axis -> both TCs on v7x
        vmem_limit_bytes=vmem_limit,
    )

    def build(single_buffer_weights):
        x_spec = pl.BlockSpec((tb, in_size), lambda i: (i, 0))
        out_spec = pl.BlockSpec((tb, np_out), lambda i: (i, 0))
        if single_buffer_weights:
            # Constant index map -> fetched once and kept VMEM-resident;
            # Buffered(1) drops the useless second pipeline buffer.
            w_specs = [pl.BlockSpec(w.shape, lambda i: (0, 0),
                                    pipeline_mode=pl.Buffered(1))
                       for w in weights]
        else:
            w_specs = [pl.BlockSpec(w.shape, lambda i: (0, 0)) for w in weights]
        return pl.pallas_call(
            kernel,
            out_shape=jax.ShapeDtypeStruct((b_pad, np_out), out_dtype),
            grid=grid,
            in_specs=[x_spec] + w_specs,
            out_specs=out_spec,
            compiler_params=cparams,
            cost_estimate=cost,
        )

    try:
        out = jax.block_until_ready(build(True)(x, *weights))
    except Exception:
        # JAX version without BlockSpec(pipeline_mode=...): fall back to the
        # default double-buffered weight specs (correct, just more VMEM).
        out = build(False)(x, *weights)

    # TODO(synk): for hidden ~4096 on v7x (64 MiB VMEM) the resident-weight
    # scheme no longer fits; a K-tiled ("arbitrary" axis) variant is needed.
    return out[:B, :action_size].astype(jnp.float32)


# --------------------------------------------------------------------------
# Init + pure-JAX reference (f32, unfused -- mirrors the PyTorch module)
# --------------------------------------------------------------------------
def init_linear(key, fan_in, fan_out):
    """PyTorch nn.Linear default init: U(-1/sqrt(fan_in), 1/sqrt(fan_in))."""
    kw, kb = jax.random.split(key)
    bound = 1.0 / jnp.sqrt(float(fan_in))
    w = jax.random.uniform(kw, (fan_in, fan_out), jnp.float32, -bound, bound)
    b = jax.random.uniform(kb, (1, fan_out), jnp.float32, -bound, bound)
    return w, b


def init_params(key, input_size, action_size, hidden_size):
    half = hidden_size // 2
    k = jax.random.split(key, 6)
    w1, b1 = init_linear(k[0], input_size, hidden_size)
    w2, b2 = init_linear(k[1], hidden_size, hidden_size)
    wv1, bv1 = init_linear(k[2], hidden_size, half)
    wv2, bv2 = init_linear(k[3], half, 1)
    wa1, ba1 = init_linear(k[4], hidden_size, half)
    wa2, ba2 = init_linear(k[5], half, action_size)
    return dict(w1=w1, b1=b1, w2=w2, b2=b2,
                wv1=wv1, bv1=bv1, wv2=wv2, bv2=bv2,
                wa1=wa1, ba1=ba1, wa2=wa2, ba2=ba2)


def reference_forward(x, p):
    h = jnp.maximum(x @ p["w1"] + p["b1"], 0.0)
    h = jnp.maximum(h @ p["w2"] + p["b2"], 0.0)
    v = jnp.maximum(h @ p["wv1"] + p["bv1"], 0.0) @ p["wv2"] + p["bv2"]
    a = jnp.maximum(h @ p["wa1"] + p["ba1"], 0.0) @ p["wa2"] + p["ba2"]
    return v + (a - a.mean(axis=1, keepdims=True))


if __name__ == "__main__":
    # 2048 board flattened: 4x4 = 16 inputs, 4 actions; small hidden for demo
    # (gets zero-padded to 128 lanes inside pack_params).
    B, INPUT_SIZE, ACTION_SIZE, HIDDEN = 2, 16, 4, 32

    key = jax.random.PRNGKey(0)
    k_params, k_x = jax.random.split(key)
    params = init_params(k_params, INPUT_SIZE, ACTION_SIZE, HIDDEN)
    x = jax.random.normal(k_x, (B, INPUT_SIZE), jnp.float32)

    packed = pack_params(params, ACTION_SIZE, compute_dtype=jnp.bfloat16)
    q = dueling_q_forward(x, packed)
    jax.block_until_ready(q)

    q_ref = reference_forward(x, params)
    assert q.shape == (B, ACTION_SIZE)
    # bf16 matmul operands / bf16 head store (f32 accumulate) -> loosened tol.
    assert jnp.allclose(q, q_ref, atol=5e-2, rtol=5e-2), (
        f"mismatch vs reference, max abs err = {jnp.max(jnp.abs(q - q_ref))}")

    print("KERNEL_OK")
</pallas_src>

<mosaic_0001>
module attributes {stable_mosaic.version = 11 : i64} {
  func.func @dueling_q_kernel(%arg0: i32, %arg1: memref<8x16xf32, #tpu.memory_space<vmem>>, %arg2: memref<16x128xbf16, #tpu.memory_space<vmem>>, %arg3: memref<1x128xf32, #tpu.memory_space<vmem>>, %arg4: memref<128x128xbf16, #tpu.memory_space<vmem>>, %arg5: memref<1x128xf32, #tpu.memory_space<vmem>>, %arg6: memref<128x256xbf16, #tpu.memory_space<vmem>>, %arg7: memref<1x256xf32, #tpu.memory_space<vmem>>, %arg8: memref<256x128xbf16, #tpu.memory_space<vmem>>, %arg9: memref<1x128xf32, #tpu.memory_space<vmem>>, %arg10: memref<8x128xbf16, #tpu.memory_space<vmem>>) attributes {dimension_semantics = [#tpu.dimension_semantics<parallel>], iteration_bounds = array<i64: 1>, scalar_prefetch = 0 : i64, scratch_operands = 0 : i64, tpu.core_type = #tpu.core_type<tc>, window_params = [{transform_indices = @transform_0, window_bounds = array<i64: 8, 16>}, {pipeline_mode = #tpu.pipeline_mode<synchronous>, transform_indices = @transform_1, window_bounds = array<i64: 16, 128>}, {pipeline_mode = #tpu.pipeline_mode<synchronous>, transform_indices = @transform_2, window_bounds = array<i64: 1, 128>}, {pipeline_mode = #tpu.pipeline_mode<synchronous>, transform_indices = @transform_3, window_bounds = array<i64: 128, 128>}, {pipeline_mode = #tpu.pipeline_mode<synchronous>, transform_indices = @transform_4, window_bounds = array<i64: 1, 128>}, {pipeline_mode = #tpu.pipeline_mode<synchronous>, transform_indices = @transform_5, window_bounds = array<i64: 128, 256>}, {pipeline_mode = #tpu.pipeline_mode<synchronous>, transform_indices = @transform_6, window_bounds = array<i64: 1, 256>}, {pipeline_mode = #tpu.pipeline_mode<synchronous>, transform_indices = @transform_7, window_bounds = array<i64: 256, 128>}, {pipeline_mode = #tpu.pipeline_mode<synchronous>, transform_indices = @transform_8, window_bounds = array<i64: 1, 128>}, {transform_indices = @transform_9, window_bounds = array<i64: 8, 128>}]} {
    %c0 = arith.constant 0 : index
    %c0_0 = arith.constant 0 : index
    %0 = vector.load %arg1[%c0, %c0_0] : memref<8x16xf32, #tpu.memory_space<vmem>>, vector<8x16xf32>
    %1 = arith.truncf %0 : vector<8x16xf32> to vector<8x16xbf16>
    %c0_1 = arith.constant 0 : index
    %c0_2 = arith.constant 0 : index
    %2 = vector.load %arg2[%c0_1, %c0_2] : memref<16x128xbf16, #tpu.memory_space<vmem>>, vector<16x128xbf16>
    %cst = arith.constant dense<0.000000e+00> : vector<8x128xf32>
    %3 = tpu.matmul %1, %2, %cst {dimension_numbers = #tpu.dot_dimension_numbers<[1], [0], [0], [1], [0, 0, 1, 1], [], []>} : vector<8x16xbf16>, vector<16x128xbf16>, vector<8x128xf32> -> vector<8x128xf32>
    %c0_3 = arith.constant 0 : index
    %c0_4 = arith.constant 0 : index
    %4 = vector.load %arg3[%c0_3, %c0_4] : memref<1x128xf32, #tpu.memory_space<vmem>>, vector<1x128xf32>
    %5 = vector.broadcast %4 : vector<1x128xf32> to vector<8x128xf32>
    %6 = arith.addf %3, %5 : vector<8x128xf32>
    %cst_5 = arith.constant 0.000000e+00 : f32
    %7 = vector.broadcast %cst_5 : f32 to vector<8x128xf32>
    %8 = arith.maximumf %6, %7 : vector<8x128xf32>
    %9 = arith.truncf %8 : vector<8x128xf32> to vector<8x128xbf16>
    %c0_6 = arith.constant 0 : index
    %c0_7 = arith.constant 0 : index
    %10 = vector.load %arg4[%c0_6, %c0_7] : memref<128x128xbf16, #tpu.memory_space<vmem>>, vector<128x128xbf16>
    %cst_8 = arith.constant dense<0.000000e+00> : vector<8x128xf32>
    %11 = tpu.matmul %9, %10, %cst_8 {dimension_numbers = #tpu.dot_dimension_numbers<[1], [0], [0], [1], [0, 0, 1, 1], [], []>} : vector<8x128xbf16>, vector<128x128xbf16>, vector<8x128xf32> -> vector<8x128xf32>
    %c0_9 = arith.constant 0 : index
    %c0_10 = arith.constant 0 : index
    %12 = vector.load %arg5[%c0_9, %c0_10] : memref<1x128xf32, #tpu.memory_space<vmem>>, vector<1x128xf32>
    %13 = vector.broadcast %12 : vector<1x128xf32> to vector<8x128xf32>
    %14 = arith.addf %11, %13 : vector<8x128xf32>
    %cst_11 = arith.constant 0.000000e+00 : f32
    %15 = vector.broadcast %cst_11 : f32 to vector<8x128xf32>
    %16 = arith.maximumf %14, %15 : vector<8x128xf32>
    %17 = arith.truncf %16 : vector<8x128xf32> to vector<8x128xbf16>
    %c0_12 = arith.constant 0 : index
    %c0_13 = arith.constant 0 : index
    %18 = vector.load %arg6[%c0_12, %c0_13] : memref<128x256xbf16, #tpu.memory_space<vmem>>, vector<128x256xbf16>
    %cst_14 = arith.constant dense<0.000000e+00> : vector<8x256xf32>
    %19 = tpu.matmul %17, %18, %cst_14 {dimension_numbers = #tpu.dot_dimension_numbers<[1], [0], [0], [1], [0, 0, 1, 1], [], []>} : vector<8x128xbf16>, vector<128x256xbf16>, vector<8x256xf32> -> vector<8x256xf32>
    %c0_15 = arith.constant 0 : index
    %c0_16 = arith.constant 0 : index
    %20 = vector.load %arg7[%c0_15, %c0_16] : memref<1x256xf32, #tpu.memory_space<vmem>>, vector<1x256xf32>
    %21 = vector.broadcast %20 : vector<1x256xf32> to vector<8x256xf32>
    %22 = arith.addf %19, %21 : vector<8x256xf32>
    %cst_17 = arith.constant 0.000000e+00 : f32
    %23 = vector.broadcast %cst_17 : f32 to vector<8x256xf32>
    %24 = arith.maximumf %22, %23 : vector<8x256xf32>
    %25 = arith.truncf %24 : vector<8x256xf32> to vector<8x256xbf16>
    %c0_18 = arith.constant 0 : index
    %c0_19 = arith.constant 0 : index
    %26 = vector.load %arg8[%c0_18, %c0_19] : memref<256x128xbf16, #tpu.memory_space<vmem>>, vector<256x128xbf16>
    %cst_20 = arith.constant dense<0.000000e+00> : vector<8x128xf32>
    %27 = tpu.matmul %25, %26, %cst_20 {dimension_numbers = #tpu.dot_dimension_numbers<[1], [0], [0], [1], [0, 0, 1, 1], [], []>} : vector<8x256xbf16>, vector<256x128xbf16>, vector<8x128xf32> -> vector<8x128xf32>
    %c0_21 = arith.constant 0 : index
    %c0_22 = arith.constant 0 : index
    %28 = vector.load %arg9[%c0_21, %c0_22] : memref<1x128xf32, #tpu.memory_space<vmem>>, vector<1x128xf32>
    %29 = vector.broadcast %28 : vector<1x128xf32> to vector<8x128xf32>
    %30 = arith.addf %27, %29 : vector<8x128xf32>
    %31 = vector.extract_strided_slice %30 {offsets = [0, 4], sizes = [8, 1], strides = [1, 1]} : vector<8x128xf32> to vector<8x1xf32>
    %cst_23 = arith.constant dense<0.000000e+00> : vector<8xf32>
    %32 = vector.multi_reduction <add>, %30, %cst_23 [1] : vector<8x128xf32> to vector<8xf32>
    %33 = vector.shape_cast %32 : vector<8xf32> to vector<8x1xf32>
    %34 = arith.subf %33, %31 : vector<8x1xf32>
    %cst_24 = arith.constant 2.500000e-01 : f32
    %35 = vector.broadcast %cst_24 : f32 to vector<8x1xf32>
    %36 = arith.mulf %34, %35 : vector<8x1xf32>
    %37 = arith.subf %31, %36 : vector<8x1xf32>
    %38 = vector.broadcast %37 : vector<8x1xf32> to vector<8x128xf32>
    %39 = arith.addf %30, %38 : vector<8x128xf32>
    %40 = arith.truncf %39 : vector<8x128xf32> to vector<8x128xbf16>
    %c0_25 = arith.constant 0 : index
    %c0_26 = arith.constant 0 : index
    %41 = vector.load %arg10[%c0_25, %c0_26] : memref<8x128xbf16, #tpu.memory_space<vmem>>, vector<8x128xbf16>
    tpu.vector_store %arg10[%c0_25, %c0_26], %40 {strides = array<i32>} : memref<8x128xbf16, #tpu.memory_space<vmem>>, vector<8x128xbf16>,
    return
  }
  func.func @transform_0(%arg0: i32) -> (i32, i32) {
    %c0_i32 = arith.constant 0 : i32
    %c0_i32_0 = arith.constant 0 : i32
    return %arg0, %c0_i32 : i32, i32
  }
  func.func @transform_1(%arg0: i32) -> (i32, i32) {
    %c0_i32 = arith.constant 0 : i32
    %c0_i32_0 = arith.constant 0 : i32
    %c0_i32_1 = arith.constant 0 : i32
    return %c0_i32, %c0_i32_0 : i32, i32
  }
  func.func @transform_2(%arg0: i32) -> (i32, i32) {
    %c0_i32 = arith.constant 0 : i32
    %c0_i32_0 = arith.constant 0 : i32
    %c0_i32_1 = arith.constant 0 : i32
    return %c0_i32, %c0_i32_0 : i32, i32
  }
  func.func @transform_3(%arg0: i32) -> (i32, i32) {
    %c0_i32 = arith.constant 0 : i32
    %c0_i32_0 = arith.constant 0 : i32
    %c0_i32_1 = arith.constant 0 : i32
    return %c0_i32, %c0_i32_0 : i32, i32
  }
  func.func @transform_4(%arg0: i32) -> (i32, i32) {
    %c0_i32 = arith.constant 0 : i32
    %c0_i32_0 = arith.constant 0 : i32
    %c0_i32_1 = arith.constant 0 : i32
    return %c0_i32, %c0_i32_0 : i32, i32
  }
  func.func @transform_5(%arg0: i32) -> (i32, i32) {
    %c0_i32 = arith.constant 0 : i32
    %c0_i32_0 = arith.constant 0 : i32
    %c0_i32_1 = arith.constant 0 : i32
    return %c0_i32, %c0_i32_0 : i32, i32
  }
  func.func @transform_6(%arg0: i32) -> (i32, i32) {
    %c0_i32 = arith.constant 0 : i32
    %c0_i32_0 = arith.constant 0 : i32
    %c0_i32_1 = arith.constant 0 : i32
    return %c0_i32, %c0_i32_0 : i32, i32
  }
  func.func @transform_7(%arg0: i32) -> (i32, i32) {
    %c0_i32 = arith.constant 0 : i32
    %c0_i32_0 = arith.constant 0 : i32
    %c0_i32_1 = arith.constant 0 : i32
    return %c0_i32, %c0_i32_0 : i32, i32
  }
  func.func @transform_8(%arg0: i32) -> (i32, i32) {
    %c0_i32 = arith.constant 0 : i32
    %c0_i32_0 = arith.constant 0 : i32
    %c0_i32_1 = arith.constant 0 : i32
    return %c0_i32, %c0_i32_0 : i32, i32
  }
  func.func @transform_9(%arg0: i32) -> (i32, i32) {
    %c0_i32 = arith.constant 0 : i32
    %c0_i32_0 = arith.constant 0 : i32
    return %arg0, %c0_i32 : i32, i32
  }
}

module attributes {stable_mosaic.version = 11 : i64} {
  func.func @dueling_q_kernel(%arg0: i32, %arg1: memref<8x16xf32, #tpu.memory_space<vmem>>, %arg2: memref<16x128xbf16, #tpu.memory_space<vmem>>, %arg3: memref<1x128xf32, #tpu.memory_space<vmem>>, %arg4: memref<128x128xbf16, #tpu.memory_space<vmem>>, %arg5: memref<1x128xf32, #tpu.memory_space<vmem>>, %arg6: memref<128x256xbf16, #tpu.memory_space<vmem>>, %arg7: memref<1x256xf32, #tpu.memory_space<vmem>>, %arg8: memref<256x128xbf16, #tpu.memory_space<vmem>>, %arg9: memref<1x128xf32, #tpu.memory_space<vmem>>, %arg10: memref<8x128xbf16, #tpu.memory_space<vmem>>) attributes {dimension_semantics = [#tpu.dimension_semantics<parallel>], iteration_bounds = array<i64: 1>, scalar_prefetch = 0 : i64, scratch_operands = 0 : i64, tpu.core_type = #tpu.core_type<tc>, window_params = [{transform_indices = @transform_0, window_bounds = array<i64: 8, 16>}, {pipeline_mode = #tpu.pipeline_mode<synchronous>, transform_indices = @transform_1, window_bounds = array<i64: 16, 128>}, {pipeline_mode = #tpu.pipeline_mode<synchronous>, transform_indices = @transform_2, window_bounds = array<i64: 1, 128>}, {pipeline_mode = #tpu.pipeline_mode<synchronous>, transform_indices = @transform_3, window_bounds = array<i64: 128, 128>}, {pipeline_mode = #tpu.pipeline_mode<synchronous>, transform_indices = @transform_4, window_bounds = array<i64: 1, 128>}, {pipeline_mode = #tpu.pipeline_mode<synchronous>, transform_indices = @transform_5, window_bounds = array<i64: 128, 256>}, {pipeline_mode = #tpu.pipeline_mode<synchronous>, transform_indices = @transform_6, window_bounds = array<i64: 1, 256>}, {pipeline_mode = #tpu.pipeline_mode<synchronous>, transform_indices = @transform_7, window_bounds = array<i64: 256, 128>}, {pipeline_mode = #tpu.pipeline_mode<synchronous>, transform_indices = @transform_8, window_bounds = array<i64: 1, 128>}, {transform_indices = @transform_9, window_bounds = array<i64: 8, 128>}]} {
    %c0 = arith.constant 0 : index
    %c0_0 = arith.constant 0 : index
    %0 = vector.load %arg1[%c0, %c0_0] : memref<8x16xf32, #tpu.memory_space<vmem>>, vector<8x16xf32>
    %1 = arith.truncf %0 : vector<8x16xf32> to vector<8x16xbf16>
    %c0_1 = arith.constant 0 : index
    %c0_2 = arith.constant 0 : index
    %2 = vector.load %arg2[%c0_1, %c0_2] : memref<16x128xbf16, #tpu.memory_space<vmem>>, vector<16x128xbf16>
    %cst = arith.constant dense<0.000000e+00> : vector<8x128xf32>
    %3 = tpu.matmul %1, %2, %cst {dimension_numbers = #tpu.dot_dimension_numbers<[1], [0], [0], [1], [0, 0, 1, 1], [], []>} : vector<8x16xbf16>, vector<16x128xbf16>, vector<8x128xf32> -> vector<8x128xf32>
    %c0_3 = arith.constant 0 : index
    %c0_4 = arith.constant 0 : index
    %4 = vector.load %arg3[%c0_3, %c0_4] : memref<1x128xf32, #tpu.memory_space<vmem>>, vector<1x128xf32>
    %5 = vector.broadcast %4 : vector<1x128xf32> to vector<8x128xf32>
    %6 = arith.addf %3, %5 : vector<8x128xf32>
    %cst_5 = arith.constant 0.000000e+00 : f32
    %7 = vector.broadcast %cst_5 : f32 to vector<8x128xf32>
    %8 = arith.maximumf %6, %7 : vector<8x128xf32>
    %9 = arith.truncf %8 : vector<8x128xf32> to vector<8x128xbf16>
    %c0_6 = arith.constant 0 : index
    %c0_7 = arith.constant 0 : index
    %10 = vector.load %arg4[%c0_6, %c0_7] : memref<128x128xbf16, #tpu.memory_space<vmem>>, vector<128x128xbf16>
    %cst_8 = arith.constant dense<0.000000e+00> : vector<8x128xf32>
    %11 = tpu.matmul %9, %10, %cst_8 {dimension_numbers = #tpu.dot_dimension_numbers<[1], [0], [0], [1], [0, 0, 1, 1], [], []>} : vector<8x128xbf16>, vector<128x128xbf16>, vector<8x128xf32> -> vector<8x128xf32>
    %c0_9 = arith.constant 0 : index
    %c0_10 = arith.constant 0 : index
    %12 = vector.load %arg5[%c0_9, %c0_10] : memref<1x128xf32, #tpu.memory_space<vmem>>, vector<1x128xf32>
    %13 = vector.broadcast %12 : vector<1x128xf32> to vector<8x128xf32>
    %14 = arith.addf %11, %13 : vector<8x128xf32>
    %cst_11 = arith.constant 0.000000e+00 : f32
    %15 = vector.broadcast %cst_11 : f32 to vector<8x128xf32>
    %16 = arith.maximumf %14, %15 : vector<8x128xf32>
    %17 = arith.truncf %16 : vector<8x128xf32> to vector<8x128xbf16>
    %c0_12 = arith.constant 0 : index
    %c0_13 = arith.constant 0 : index
    %18 = vector.load %arg6[%c0_12, %c0_13] : memref<128x256xbf16, #tpu.memory_space<vmem>>, vector<128x256xbf16>
    %cst_14 = arith.constant dense<0.000000e+00> : vector<8x256xf32>
    %19 = tpu.matmul %17, %18, %cst_14 {dimension_numbers = #tpu.dot_dimension_numbers<[1], [0], [0], [1], [0, 0, 1, 1], [], []>} : vector<8x128xbf16>, vector<128x256xbf16>, vector<8x256xf32> -> vector<8x256xf32>
    %c0_15 = arith.constant 0 : index
    %c0_16 = arith.constant 0 : index
    %20 = vector.load %arg7[%c0_15, %c0_16] : memref<1x256xf32, #tpu.memory_space<vmem>>, vector<1x256xf32>
    %21 = vector.broadcast %20 : vector<1x256xf32> to vector<8x256xf32>
    %22 = arith.addf %19, %21 : vector<8x256xf32>
    %cst_17 = arith.constant 0.000000e+00 : f32
    %23 = vector.broadcast %cst_17 : f32 to vector<8x256xf32>
    %24 = arith.maximumf %22, %23 : vector<8x256xf32>
    %25 = arith.truncf %24 : vector<8x256xf32> to vector<8x256xbf16>
    %c0_18 = arith.constant 0 : index
    %c0_19 = arith.constant 0 : index
    %26 = vector.load %arg8[%c0_18, %c0_19] : memref<256x128xbf16, #tpu.memory_space<vmem>>, vector<256x128xbf16>
    %cst_20 = arith.constant dense<0.000000e+00> : vector<8x128xf32>
    %27 = tpu.matmul %25, %26, %cst_20 {dimension_numbers = #tpu.dot_dimension_numbers<[1], [0], [0], [1], [0, 0, 1, 1], [], []>} : vector<8x256xbf16>, vector<256x128xbf16>, vector<8x128xf32> -> vector<8x128xf32>
    %c0_21 = arith.constant 0 : index
    %c0_22 = arith.constant 0 : index
    %28 = vector.load %arg9[%c0_21, %c0_22] : memref<1x128xf32, #tpu.memory_space<vmem>>, vector<1x128xf32>
    %29 = vector.broadcast %28 : vector<1x128xf32> to vector<8x128xf32>
    %30 = arith.addf %27, %29 : vector<8x128xf32>
    %31 = vector.extract_strided_slice %30 {offsets = [0, 4], sizes = [8, 1], strides = [1, 1]} : vector<8x128xf32> to vector<8x1xf32>
    %cst_23 = arith.constant dense<0.000000e+00> : vector<8xf32>
    %32 = vector.multi_reduction <add>, %30, %cst_23 [1] : vector<8x128xf32> to vector<8xf32>
    %33 = vector.shape_cast %32 : vector<8xf32> to vector<8x1xf32>
    %34 = arith.subf %33, %31 : vector<8x1xf32>
    %cst_24 = arith.constant 2.500000e-01 : f32
    %35 = vector.broadcast %cst_24 : f32 to vector<8x1xf32>
    %36 = arith.mulf %34, %35 : vector<8x1xf32>
    %37 = arith.subf %31, %36 : vector<8x1xf32>
    %38 = vector.broadcast %37 : vector<8x1xf32> to vector<8x128xf32>
    %39 = arith.addf %30, %38 : vector<8x128xf32>
    %40 = arith.truncf %39 : vector<8x128xf32> to vector<8x128xbf16>
    %c0_25 = arith.constant 0 : index
    %c0_26 = arith.constant 0 : index
    %41 = vector.load %arg10[%c0_25, %c0_26] : memref<8x128xbf16, #tpu.memory_space<vmem>>, vector<8x128xbf16>
    tpu.vector_store %arg10[%c0_25, %c0_26], %40 {strides = array<i32>} : memref<8x128xbf16, #tpu.memory_space<vmem>>, vector<8x128xbf16>,
    return
  }
  func.func @transform_0(%arg0: i32) -> (i32, i32) {
    %c0_i32 = arith.constant 0 : i32
    %c0_i32_0 = arith.constant 0 : i32
    return %arg0, %c0_i32 : i32, i32
  }
  func.func @transform_1(%arg0: i32) -> (i32, i32) {
    %c0_i32 = arith.constant 0 : i32
    %c0_i32_0 = arith.constant 0 : i32
    %c0_i32_1 = arith.constant 0 : i32
    return %c0_i32, %c0_i32_0 : i32, i32
  }
  func.func @transform_2(%arg0: i32) -> (i32, i32) {
    %c0_i32 = arith.constant 0 : i32
    %c0_i32_0 = arith.constant 0 : i32
    %c0_i32_1 = arith.constant 0 : i32
    return %c0_i32, %c0_i32_0 : i32, i32
  }
  func.func @transform_3(%arg0: i32) -> (i32, i32) {
    %c0_i32 = arith.constant 0 : i32
    %c0_i32_0 = arith.constant 0 : i32
    %c0_i32_1 = arith.constant 0 : i32
    return %c0_i32, %c0_i32_0 : i32, i32
  }
  func.func @transform_4(%arg0: i32) -> (i32, i32) {
    %c0_i32 = arith.constant 0 : i32
    %c0_i32_0 = arith.constant 0 : i32
    %c0_i32_1 = arith.constant 0 : i32
    return %c0_i32, %c0_i32_0 : i32, i32
  }
  func.func @transform_5(%arg0: i32) -> (i32, i32) {
    %c0_i32 = arith.constant 0 : i32
    %c0_i32_0 = arith.constant 0 : i32
    %c0_i32_1 = arith.constant 0 : i32
    return %c0_i32, %c0_i32_0 : i32, i32
  }
  func.func @transform_6(%arg0: i32) -> (i32, i32) {
    %c0_i32 = arith.constant 0 : i32
    %c0_i32_0 = arith.constant 0 : i32
    %c0_i32_1 = arith.constant 0 : i32
    return %c0_i32, %c0_i32_0 : i32, i32
  }
  func.func @transform_7(%arg0: i32) -> (i32, i32) {
    %c0_i32 = arith.constant 0 : i32
    %c0_i32_0 = arith.constant 0 : i32
    %c0_i32_1 = arith.constant 0 : i32
    return %c0_i32, %c0_i32_0 : i32, i32
  }
  func.func @transform_8(%arg0: i32) -> (i32, i32) {
    %c0_i32 = arith.constant 0 : i32
    %c0_i32_0 = arith.constant 0 : i32
    %c0_i32_1 = arith.constant 0 : i32
    return %c0_i32, %c0_i32_0 : i32, i32
  }
  func.func @transform_9(%arg0: i32) -> (i32, i32) {
    %c0_i32 = arith.constant 0 : i32
    %c0_i32_0 = arith.constant 0 : i32
    return %arg0, %c0_i32 : i32, i32
  }
}

</mosaic_0001>

<bundles_post_ra>
// kernel: tpu_custom_call.1
= control target key start
LH: loop header
LB: loop body
LE: loop exit
PB: predicated region body
PF: predicated region fallthrough
CT: control target
= control target key end

     0   :  { %14 = vsyncpa [#allocation3], 0  ;;  %s1064_s0 = inlined_call_operand.hbm [shape: f32[8,16], index: 0, kind: input, shape index: {}]   ;;  %s1065_s1 = inlined_call_operand.hbm [shape: bf16[16,128], index: 1, kind: input, shape index: {}]   ;;  %s1066_s2 = inlined_call_operand.vmem [shape: f32[1,128], index: 2, kind: input, shape index: {}]   ;;  %s1067_s3 = inlined_call_operand.hbm [shape: bf16[128,128], index: 3, kind: input, shape index: {}]   ;;  %s1068_s4 = inlined_call_operand.hbm [shape: f32[1,128], index: 4, kind: input, shape index: {}]   ;;  %s1069_s5 = inlined_call_operand.hbm [shape: bf16[128,256], index: 5, kind: input, shape index: {}]   ;;  %s1070_s6 = inlined_call_operand.vmem [shape: f32[1,256], index: 6, kind: input, shape index: {}]   ;;  %s1071_s7 = inlined_call_operand.hbm [shape: bf16[256,128], index: 7, kind: input, shape index: {}]   ;;  %s1072_s8 = inlined_call_operand.vmem [shape: f32[1,128], index: 8, kind: input, shape index: {}]   ;;  %s1073_s9 = inlined_call_operand.hbm [shape: bf16[8,128], index: 9, kind: output, shape index: {}]  }
   0x1   :  { %15 = vsyncpa [#allocation6], 0 }
   0x2   :  { %16 = vsyncpa [#allocation9], 0 }
   0x3   :  { %17 = vsyncpa [#allocation12], 0  ;;  %s34_s11 = sshll.u32 %s1065_s1, 4  ;;  %s35_s11 = int_to_ptr.hbm [resolvable:$true] %s34_s11 }
   0x4   :  { %18 = vsyncpa [#allocation4], 0  ;;  %s963_s12 = smov [#allocation5]   ;;  %s63_s16 = sshll.u32 %s1068_s4, 4  ;;  %s64_s16 = int_to_ptr.hbm [resolvable:$true] %s63_s16 }
   0x5   :  { %s36_s13 = sshll.u32 %s963_s12, 4  ;;  %s964_s17 = smov 64   ;;  %s37_s13 = int_to_ptr.vmem [resolvable:$true] %s36_s13 }
   0x6   :  { %s965_s18 = smov 4   ;;  %s966_s19 = smov [#allocation8]  }
   0x7   :  { %42 = dma.hbm_to_vmem [thread:$0]  %s35_s11, 128, %s37_s13, [#allocation6], %s964_s17, %s964_s17, %s965_s18  }
   0x8   :  { %s65_s20 = sshll.u32 %s966_s19, 4  ;;  %s24_s22 = sshll.u32 %s1064_s0, 4  ;;  %s66_s20 = int_to_ptr.vmem [resolvable:$true] %s65_s20  ;;  %s25_s22 = int_to_ptr.hbm [resolvable:$true] %s24_s22 }
   0x9   :  { %68 = dma.hbm_to_vmem [thread:$0]  %s64_s16, 16, %s66_s20, [#allocation9]  }
   0xa   :  { %s49_s4 = sshll.u32 %s1067_s3, 4  ;;  %s967_s25 = smov [#allocation2]   ;;  %s50_s4 = int_to_ptr.hbm [resolvable:$true] %s49_s4 }
   0xb   :  { %s26_s26 = sshll.u32 %s967_s25, 4  ;;  %s968_s27 = smov [#allocation7]   ;;  %s27_s26 = int_to_ptr.vmem [resolvable:$true] %s26_s26 }
   0xc   :  { %29 = dma.hbm_to_vmem [thread:$0]  %s25_s22, 128, %s27_s26, [#allocation3]  }
   0xd   :  { %s51_s28 = sshll.u32 %s968_s27, 4  ;;  %s73_s10 = sshll.u32 %s1069_s5, 4  ;;  %s52_s28 = int_to_ptr.vmem [resolvable:$true] %s51_s28  ;;  %s74_s10 = int_to_ptr.hbm [resolvable:$true] %s73_s10 }
   0xe   :  { %57 = dma.hbm_to_vmem [thread:$0]  %s50_s4, 1024, %s52_s28, [#allocation6], %s964_s17, %s964_s17, %s965_s18  }
   0xf   :  { %s969_s0 = smov [#allocation10]   ;;  %s88_s13 = sshll.u32 %s1071_s7, 4  ;;  %s89_s13 = int_to_ptr.hbm [resolvable:$true] %s88_s13 }
  0x10   :  { %s75_s11 = sshll.u32 %s969_s0, 4  ;;  %s970_s14 = smov 128   ;;  %s76_s11 = int_to_ptr.vmem [resolvable:$true] %s75_s11 }
  0x11   :  { %s971_s15 = smov 8   ;;  %s972_s16 = smov [#allocation11]  }
  0x12   :  { %81 = dma.hbm_to_vmem [thread:$0]  %s74_s10, 2048, %s76_s11, [#allocation9], %s970_s14, %s970_s14, %s971_s15  }
  0x13   :  { %s90_s19 = sshll.u32 %s972_s16, 4  ;;  %s91_s19 = int_to_ptr.vmem [resolvable:$true] %s90_s19 }
  0x14   :  { %96 = dma.hbm_to_vmem [thread:$0]  %s89_s13, 2048, %s91_s19, [#allocation12], %s964_s17, %s964_s17, %s965_s18  }
  0x15   :  { %953 = dma.done.wait [#allocation3], 128  }
  0x16   :  { %954 = vsyncadd [#allocation3], 4294967168 }
  0x17   :  { %955 = dma.done.wait [#allocation6], 1152  }
  0x18   :  { %956 = vsyncadd [#allocation6], 4294966144 }
  0x19   :  { %957 = dma.done.wait [#allocation9], 2064  }
  0x1a   :  { %958 = vsyncadd [#allocation9], 4294965232 }
  0x1b   :  { %959 = dma.done.wait [#allocation12], 2048  }
  0x1c   :  { %960 = vsyncadd [#allocation12], 4294965248  ;;  %v728_v0 = vld [vmem:[#allocation5] sm:$0xff]  ;;  %v124_v1 = vld [vmem:[#allocation2] sm:$0xff]  ;;  %vm138_vm0 = vcmask 130048  }
  0x1d   :  { %v736_v2 = vld [vmem:[#allocation7 + $0x38] sm:$0xff]  ;;  %v125_v3 = vpack.c.bf16 %v124_v1, %v124_v1  ;;  %149 = vmatpush.bf16.msra.mxu0 %v728_v0  ;;  %v735_v4 = vld [vmem:[#allocation7 + $0x30] sm:$0xff]  ;;  %v734_v5 = vld [vmem:[#allocation7 + $0x28] sm:$0xff] }
  0x1e   :  { %225 = vmatpush.bf16.msra.mxu1 %v736_v2  ;;  %v733_v6 = vld [vmem:[#allocation7 + $0x20] sm:$0xff]  ;;  %v732_v7 = vld [vmem:[#allocation7 + $0x18] sm:$0xff]  ;;  %v731_v8 = vld [vmem:[#allocation7 + $0x10] sm:$0xff] }
  0x1f   :  { %v730_v9 = vld [vmem:[#allocation7 + $0x8] sm:$0xff]  ;;  %v729_v10 = vld [vmem:[#allocation7] sm:$0xff]  ;;  %v658_v11 = vld [vmem:[#allocation10 + $0x70] sm:$0xf] }
  0x20   :  { %567 = vmatmul.msk.bf16.vlgmr.msra.gmra.mxu0 %vm138_vm0, %v125_v3  ;;  %v752_v12 = vld [vmem:[#allocation10 + $0x74] sm:$0xf0]  ;;  %v751_v13 = vld [vmem:[#allocation10 + $0x74] sm:$0xf]  ;;  %v660_v15 = vld [vmem:[#allocation10 + $0x78] sm:$0xf0] }
  0x21   :  { %v659_v14 = vor.u32 %v752_v12, %v658_v11  ;;  %v650_v16 = vld [vmem:[#allocation10 + $0x60] sm:$0xf]  ;;  %v750_v17 = vld [vmem:[#allocation10 + $0x64] sm:$0xf0]  ;;  %v663_v18 = vor.u32 %v751_v13, %v660_v15  ;;  %v749_v19 = vld [vmem:[#allocation10 + $0x64] sm:$0xf] }
  0x22   :  { %226 = vmatpush.bf16.msra.mxu1 %v735_v4  ;;  %v652_v20 = vld [vmem:[#allocation10 + $0x68] sm:$0xf0]  ;;  %v651_v21 = vor.u32 %v750_v17, %v650_v16  ;;  %v642_v23 = vld [vmem:[#allocation10 + $0x50] sm:$0xf]  ;;  %v748_v24 = vld [vmem:[#allocation10 + $0x54] sm:$0xf0] }
  0x23   :  { %342 = vmatpush.bf16.msra.mxu2 %v659_v14  ;;  %355 = vmatpush.bf16.msra.mxu3 %v663_v18  ;;  %v655_v22 = vor.u32 %v749_v19, %v652_v20  ;;  %v747_v25 = vld [vmem:[#allocation10 + $0x54] sm:$0xf]  ;;  %v644_v26 = vld [vmem:[#allocation10 + $0x58] sm:$0xf0]  ;;  %v643_v27 = vor.u32 %v748_v24, %v642_v23  ;;  %v634_v29 = vld [vmem:[#allocation10 + $0x40] sm:$0xf] }
  0x24   :  { %v647_v28 = vor.u32 %v747_v25, %v644_v26  ;;  %v746_v30 = vld [vmem:[#allocation10 + $0x44] sm:$0xf0]  ;;  %v745_v31 = vld [vmem:[#allocation10 + $0x44] sm:$0xf]  ;;  %v636_v32 = vld [vmem:[#allocation10 + $0x48] sm:$0xf0] }
  0x25   :  { %v635_v33 = vor.u32 %v746_v30, %v634_v29  ;;  %v639_v34 = vor.u32 %v745_v31, %v636_v32  ;;  %v626_v35 = vld [vmem:[#allocation10 + $0x30] sm:$0xf]  ;;  %v744_v36 = vld [vmem:[#allocation10 + $0x34] sm:$0xf0]  ;;  %v743_v37 = vld [vmem:[#allocation10 + $0x34] sm:$0xf] }
  0x26   :  { %227 = vmatpush.bf16.msra.mxu1 %v734_v5  ;;  %v628_v38 = vld [vmem:[#allocation10 + $0x38] sm:$0xf0]  ;;  %v627_v39 = vor.u32 %v744_v36, %v626_v35  ;;  %v618_v41 = vld [vmem:[#allocation10 + $0x20] sm:$0xf]  ;;  %v742_v42 = vld [vmem:[#allocation10 + $0x24] sm:$0xf0] }
  0x27   :  { %343 = vmatpush.bf16.msra.mxu2 %v651_v21  ;;  %356 = vmatpush.bf16.msra.mxu3 %v655_v22  ;;  %v631_v40 = vor.u32 %v743_v37, %v628_v38  ;;  %v741_v43 = vld [vmem:[#allocation10 + $0x24] sm:$0xf]  ;;  %v620_v44 = vld [vmem:[#allocation10 + $0x28] sm:$0xf0]  ;;  %v619_v45 = vor.u32 %v742_v42, %v618_v41  ;;  %v610_v53 = vld [vmem:[#allocation10 + $0x10] sm:$0xf] }
  0x28   :  { %v623_v46 = vor.u32 %v741_v43, %v620_v44  ;;  %v782_v47 = vld [vmem:[%s1066_s2] ss:$0 sm:$0xff]  ;;  %v740_v54 = vld [vmem:[#allocation10 + $0x14] sm:$0xf0]  ;;  %v739_v55 = vld [vmem:[#allocation10 + $0x14] sm:$0xf] }
  0x29   :  { %v611_v56 = vor.u32 %v740_v54, %v610_v53  ;;  %v612_v57 = vld [vmem:[#allocation10 + $0x18] sm:$0xf0]  ;;  %v602_v59 = vld [vmem:[#allocation10] sm:$0xf]  ;;  %v738_v60 = vld [vmem:[#allocation10 + $0x4] sm:$0xf0] }
  0x2a   :  { %228 = vmatpush.bf16.msra.mxu1 %v733_v6  ;;  %v615_v58 = vor.u32 %v739_v55, %v612_v57  ;;  %v737_v61 = vld [vmem:[#allocation10 + $0x4] sm:$0xf]  ;;  %v603_v62 = vor.u32 %v738_v60, %v602_v59  ;;  %v604_v63 = vld [vmem:[#allocation10 + $0x8] sm:$0xf0]  ;;  %v760_v1 = vld [vmem:[#allocation11 + $0x38] sm:$0xff]  ;;  %v973_v43 = vmov 4  }
  0x2b   :  { %344 = vmatpush.bf16.msra.mxu2 %v643_v27  ;;  %357 = vmatpush.bf16.msra.mxu3 %v647_v28  ;;  %v607_v0 = vor.u32 %v737_v61, %v604_v63  ;;  %v768_v2 = vld [vmem:[#allocation11 + $0x78] sm:$0xff]  ;;  %v759_v3 = vld [vmem:[#allocation11 + $0x30] sm:$0xff]  ;;  %v758_v5 = vld [vmem:[#allocation11 + $0x28] sm:$0xff] }
  0x2c   :  { %504 = vmatpush.bf16.msrb.mxu0 %v760_v1  ;;  %v767_v4 = vld [vmem:[#allocation11 + $0x70] sm:$0xff]  ;;  %v766_v6 = vld [vmem:[#allocation11 + $0x68] sm:$0xff]  ;;  %v783_v13 = vld [vmem:[#allocation8] ss:$0 sm:$0xff]  ;;  %781 = vset.pattern.permute.xlu0 %v973_v43 }
  0x2d   :  { %v755_v11 = vld [vmem:[#allocation11 + $0x10] sm:$0xff]  ;;  %v754_v19 = vld [vmem:[#allocation11 + $0x8] sm:$0xff]  ;;  %v753_v21 = vld [vmem:[#allocation11] sm:$0xff] }
  0x2e   :  { %229 = vmatpush.bf16.msra.mxu1 %v732_v7  ;;  %v757_v7 = vld [vmem:[#allocation11 + $0x20] sm:$0xff]  ;;  %v763_v12 = vld [vmem:[#allocation11 + $0x50] sm:$0xff]  ;;  %v762_v20 = vld [vmem:[#allocation11 + $0x48] sm:$0xff] }
  0x2f   :  { %345 = vmatpush.bf16.msra.mxu2 %v635_v33  ;;  %358 = vmatpush.bf16.msra.mxu3 %v639_v34  ;;  %v761_v22 = vld [vmem:[#allocation11 + $0x40] sm:$0xff]  ;;  %v256_v23 = vld [vmem:[%s1070_s6] sm:$0x3]  ;;  %s974_s6 = smov [#allocation13]  }
  0x30   :  { %505 = vmatpush.bf16.msrb.mxu0 %v759_v3  ;;  %v258_v24 = vperm.slane %v256_v23, 0  ;;  %v259_v25 = vperm.slane %v256_v23, 1  ;;  %v784_v36 = vld [vmem:[%s1072_s8] ss:$0 sm:$0xff]  ;;  %s548_s21 = sshll.u32 %s974_s6, 4  ;;  %s550_s8 = sshll.u32 %s1073_s9, 4  ;;  %s549_s21 = int_to_ptr.vmem [resolvable:$true] %s548_s21  ;;  %s551_s8 = int_to_ptr.hbm [resolvable:$true] %s550_s8 }
  0x32   :  { %230 = vmatpush.bf16.msra.mxu1 %v731_v8  ;;  %v765_v8 = vld [vmem:[#allocation11 + $0x60] sm:$0xff] }
  0x33   :  { %346 = vmatpush.bf16.msra.mxu2 %v627_v39  ;;  %359 = vmatpush.bf16.msra.mxu3 %v631_v40 }
  0x34   :  { %506 = vmatpush.bf16.msrb.mxu0 %v758_v5 }
  0x36   :  { %231 = vmatpush.bf16.msra.mxu1 %v730_v9  ;;  %v756_v9 = vld [vmem:[#allocation11 + $0x18] sm:$0xff] }
  0x37   :  { %347 = vmatpush.bf16.msra.mxu2 %v619_v45  ;;  %360 = vmatpush.bf16.msra.mxu3 %v623_v46 }
  0x38   :  { %507 = vmatpush.bf16.msrb.mxu0 %v757_v7 }
  0x3a   :  { %232 = vmatpush.bf16.msra.mxu1 %v729_v10  ;;  %v764_v10 = vld [vmem:[#allocation11 + $0x58] sm:$0xff] }
  0x3b   :  { %348 = vmatpush.bf16.msra.mxu2 %v611_v56  ;;  %361 = vmatpush.bf16.msra.mxu3 %v615_v58 }
  0x3c   :  { %508 = vmatpush.bf16.msrb.mxu0 %v756_v9 }
  0x3e   :  { %517 = vmatpush.bf16.msrb.mxu1 %v768_v2 }
  0x3f   :  { %349 = vmatpush.bf16.msra.mxu2 %v603_v62  ;;  %362 = vmatpush.bf16.msra.mxu3 %v607_v0 }
  0x40   :  { %509 = vmatpush.bf16.msrb.mxu0 %v755_v11 }
  0x42   :  { %518 = vmatpush.bf16.msrb.mxu1 %v767_v4 }
  0x44   :  { %510 = vmatpush.bf16.msrb.mxu0 %v754_v19 }
  0x46   :  { %519 = vmatpush.bf16.msrb.mxu1 %v766_v6 }
  0x48   :  { %511 = vmatpush.bf16.msrb.mxu0 %v753_v21 }
  0x4a   :  { %520 = vmatpush.bf16.msrb.mxu1 %v765_v8 }
  0x4e   :  { %521 = vmatpush.bf16.msrb.mxu1 %v764_v10 }
  0x52   :  { %522 = vmatpush.bf16.msrb.mxu1 %v763_v12 }
  0x56   :  { %523 = vmatpush.bf16.msrb.mxu1 %v762_v20 }
  0x5a   :  { %524 = vmatpush.bf16.msrb.mxu1 %v761_v22 }
  0x9d   :  { %v151_v48 = vpop.f32.mrf.mxu0 }
  0x9e   :  { %v152_v49 = vadd.f32 %v782_v47, %v151_v48 }
  0xa0   :  { %v155_v50 = vmax.f32 %v152_v49, 0.0 }
  0xa2   :  { %v156_v51 = vpack.c.bf16 %v155_v50, %v155_v50 }
  0xa4   :  { %233 = vmatmul.bf16.vlgmr.msra.gmra.mxu1 %v156_v51 }
  0xa5   :  { %v153_v52 = vpop.f32.mrf.mxu0 }
 0x121   :  { %v234_v14 = vpop.f32.mrf.mxu1 }
 0x122   :  { %v235_v15 = vadd.f32 %v783_v13, %v234_v14 }
 0x124   :  { %v238_v16 = vmax.f32 %v235_v15, 0.0 }
 0x126   :  { %v239_v17 = vpack.c.bf16 %v238_v16, %v238_v16 }
 0x128   :  { %350 = vmatmul.bf16.vlgmr.msra.gmra.mxu2 %v239_v17  ;;  %363 = vmatmul.bf16.vlgmr.msra.gmra.mxu3 %v239_v17 }
 0x129   :  { %v236_v18 = vpop.f32.mrf.mxu1 }
 0x1ab   :  { %v351_v26 = vpop.f32.mrf.mxu2  ;;  %v364_v27 = vpop.f32.mrf.mxu3 }
 0x1ac   :  { %v352_v28 = vadd.f32 %v351_v26, %v258_v24  ;;  %v365_v29 = vadd.f32 %v364_v27, %v259_v25 }
 0x1ae   :  { %v368_v30 = vmax.f32 %v352_v28, 0.0  ;;  %v369_v31 = vmax.f32 %v365_v29, 0.0 }
 0x1b0   :  { %v370_v32 = vpack.c.bf16 %v368_v30, %v368_v30  ;;  %v371_v33 = vpack.c.bf16 %v369_v31, %v369_v31 }
 0x1b2   :  { %512 = vmatmul.bf16.vlgmr.msrb.gmra.mxu0 %v370_v32  ;;  %525 = vmatmul.bf16.vlgmr.msrb.gmra.mxu1 %v371_v33 }
 0x1b3   :  { %v353_v34 = vpop.f32.mrf.mxu2  ;;  %v366_v35 = vpop.f32.mrf.mxu3 }
 0x22f   :  { %v513_v37 = vpop.f32.mrf.mxu0  ;;  %v526_v38 = vpop.f32.mrf.mxu1 }
 0x230   :  { %v514_v39 = vadd.f32 %v784_v36, %v513_v37 }
 0x232   :  { %v527_v40 = vadd.f32 %v526_v38, %v514_v39 }
 0x234   :  { %530 = vadd.xlane.f32.xlu0 %v527_v40 }
 0x237   :  { %v515_v41 = vpop.f32.mrf.mxu0  ;;  %v528_v42 = vpop.f32.mrf.mxu1 }
 0x2a7   :  { %v531_v44 = vpop.xlane.xlu0 %530 }
 0x2a8   :  { %v532_v45 = vsub.f32 %v531_v44, %v527_v40 }
 0x2aa   :  { %v533_v46 = vmul.f32 0.25, %v532_v45 }
 0x2ac   :  { %v534_v47 = vsub.f32 %v527_v40, %v533_v46 }
 0x2ae   :  { %537 = vperm.xlu0 %781, %v534_v47  }
 0x320   :  { %v538_v48 = vpop.permute.xlu0 %537 }
 0x321   :  { %v540_v49 = vadd.f32 %v538_v48, %v527_v40 }
 0x323   :  { %v541_v50 = vpack.c.bf16 %v540_v49, %v540_v49 }
 0x325   :  { %542 = vst [vmem:[#allocation13] sm:$0xf] %v541_v50 }
 0x326   :  { %553 = dma.vmem_to_hbm [thread:$0]  %s549_s21, 64, %s551_s8, [#allocation4]  }
 0x327   :  { %961 = dma.done.wait [#allocation4], 64  }
 0x328   :  { %962 = vsyncadd [#allocation4], 4294967232 }
 0x329   :  { %558 = vsyncpa [#allocation3], 1 }
 0x32a   :  { %559 = vsyncpa [#allocation6], 1 }
 0x32b   :  { %560 = vsyncpa [#allocation9], 1 }
 0x32c   :  { %561 = vsyncpa [#allocation12], 1 }
 0x32d   :  { %562 = vsyncpa [#allocation4], 1 }

// kernel: tpu_custom_call.1
= control target key start
LH: loop header
LB: loop body
LE: loop exit
PB: predicated region body
PF: predicated region fallthrough
CT: control target
= control target key end

     0   :  { %14 = vsyncpa [#allocation3], 0  ;;  %s1064_s0 = inlined_call_operand.hbm [shape: f32[8,16], index: 0, kind: input, shape index: {}]   ;;  %s1065_s1 = inlined_call_operand.hbm [shape: bf16[16,128], index: 1, kind: input, shape index: {}]   ;;  %s1066_s2 = inlined_call_operand.vmem [shape: f32[1,128], index: 2, kind: input, shape index: {}]   ;;  %s1067_s3 = inlined_call_operand.hbm [shape: bf16[128,128], index: 3, kind: input, shape index: {}]   ;;  %s1068_s4 = inlined_call_operand.hbm [shape: f32[1,128], index: 4, kind: input, shape index: {}]   ;;  %s1069_s5 = inlined_call_operand.hbm [shape: bf16[128,256], index: 5, kind: input, shape index: {}]   ;;  %s1070_s6 = inlined_call_operand.vmem [shape: f32[1,256], index: 6, kind: input, shape index: {}]   ;;  %s1071_s7 = inlined_call_operand.hbm [shape: bf16[256,128], index: 7, kind: input, shape index: {}]   ;;  %s1072_s8 = inlined_call_operand.vmem [shape: f32[1,128], index: 8, kind: input, shape index: {}]   ;;  %s1073_s9 = inlined_call_operand.hbm [shape: bf16[8,128], index: 9, kind: output, shape index: {}]  }
   0x1   :  { %15 = vsyncpa [#allocation6], 0 }
   0x2   :  { %16 = vsyncpa [#allocation9], 0 }
   0x3   :  { %17 = vsyncpa [#allocation12], 0  ;;  %s34_s11 = sshll.u32 %s1065_s1, 4  ;;  %s35_s11 = int_to_ptr.hbm [resolvable:$true] %s34_s11 }
   0x4   :  { %18 = vsyncpa [#allocation4], 0  ;;  %s963_s12 = smov [#allocation5]   ;;  %s63_s16 = sshll.u32 %s1068_s4, 4  ;;  %s64_s16 = int_to_ptr.hbm [resolvable:$true] %s63_s16 }
   0x5   :  { %s36_s13 = sshll.u32 %s963_s12, 4  ;;  %s964_s17 = smov 64   ;;  %s37_s13 = int_to_ptr.vmem [resolvable:$true] %s36_s13 }
   0x6   :  { %s965_s18 = smov 4   ;;  %s966_s19 = smov [#allocation8]  }
   0x7   :  { %42 = dma.hbm_to_vmem [thread:$0]  %s35_s11, 128, %s37_s13, [#allocation6], %s964_s17, %s964_s17, %s965_s18  }
   0x8   :  { %s65_s20 = sshll.u32 %s966_s19, 4  ;;  %s24_s22 = sshll.u32 %s1064_s0, 4  ;;  %s66_s20 = int_to_ptr.vmem [resolvable:$true] %s65_s20  ;;  %s25_s22 = int_to_ptr.hbm [resolvable:$true] %s24_s22 }
   0x9   :  { %68 = dma.hbm_to_vmem [thread:$0]  %s64_s16, 16, %s66_s20, [#allocation9]  }
   0xa   :  { %s49_s4 = sshll.u32 %s1067_s3, 4  ;;  %s967_s25 = smov [#allocation2]   ;;  %s50_s4 = int_to_ptr.hbm [resolvable:$true] %s49_s4 }
   0xb   :  { %s26_s26 = sshll.u32 %s967_s25, 4  ;;  %s968_s27 = smov [#allocation7]   ;;  %s27_s26 = int_to_ptr.vmem [resolvable:$true] %s26_s26 }
   0xc   :  { %29 = dma.hbm_to_vmem [thread:$0]  %s25_s22, 128, %s27_s26, [#allocation3]  }
   0xd   :  { %s51_s28 = sshll.u32 %s968_s27, 4  ;;  %s73_s10 = sshll.u32 %s1069_s5, 4  ;;  %s52_s28 = int_to_ptr.vmem [resolvable:$true] %s51_s28  ;;  %s74_s10 = int_to_ptr.hbm [resolvable:$true] %s73_s10 }
   0xe   :  { %57 = dma.hbm_to_vmem [thread:$0]  %s50_s4, 1024, %s52_s28, [#allocation6], %s964_s17, %s964_s17, %s965_s18  }
   0xf   :  { %s969_s0 = smov [#allocation10]   ;;  %s88_s13 = sshll.u32 %s1071_s7, 4  ;;  %s89_s13 = int_to_ptr.hbm [resolvable:$true] %s88_s13 }
  0x10   :  { %s75_s11 = sshll.u32 %s969_s0, 4  ;;  %s970_s14 = smov 128   ;;  %s76_s11 = int_to_ptr.vmem [resolvable:$true] %s75_s11 }
  0x11   :  { %s971_s15 = smov 8   ;;  %s972_s16 = smov [#allocation11]  }
  0x12   :  { %81 = dma.hbm_to_vmem [thread:$0]  %s74_s10, 2048, %s76_s11, [#allocation9], %s970_s14, %s970_s14, %s971_s15  }
  0x13   :  { %s90_s19 = sshll.u32 %s972_s16, 4  ;;  %s91_s19 = int_to_ptr.vmem [resolvable:$true] %s90_s19 }
  0x14   :  { %96 = dma.hbm_to_vmem [thread:$0]  %s89_s13, 2048, %s91_s19, [#allocation12], %s964_s17, %s964_s17, %s965_s18  }
  0x15   :  { %953 = dma.done.wait [#allocation3], 128  }
  0x16   :  { %954 = vsyncadd [#allocation3], 4294967168 }
  0x17   :  { %955 = dma.done.wait [#allocation6], 1152  }
  0x18   :  { %956 = vsyncadd [#allocation6], 4294966144 }
  0x19   :  { %957 = dma.done.wait [#allocation9], 2064  }
  0x1a   :  { %958 = vsyncadd [#allocation9], 4294965232 }
  0x1b   :  { %959 = dma.done.wait [#allocation12], 2048  }
  0x1c   :  { %960 = vsyncadd [#allocation12], 4294965248  ;;  %v728_v0 = vld [vmem:[#allocation5] sm:$0xff]  ;;  %v124_v1 = vld [vmem:[#allocation2] sm:$0xff]  ;;  %vm138_vm0 = vcmask 130048  }
  0x1d   :  { %v736_v2 = vld [vmem:[#allocation7 + $0x38] sm:$0xff]  ;;  %v125_v3 = vpack.c.bf16 %v124_v1, %v124_v1  ;;  %149 = vmatpush.bf16.msra.mxu0 %v728_v0  ;;  %v735_v4 = vld [vmem:[#allocation7 + $0x30] sm:$0xff]  ;;  %v734_v5 = vld [vmem:[#allocation7 + $0x28] sm:$0xff] }
  0x1e   :  { %225 = vmatpush.bf16.msra.mxu1 %v736_v2  ;;  %v733_v6 = vld [vmem:[#allocation7 + $0x20] sm:$0xff]  ;;  %v732_v7 = vld [vmem:[#allocation7 + $0x18] sm:$0xff]  ;;  %v731_v8 = vld [vmem:[#allocation7 + $0x10] sm:$0xff] }
  0x1f   :  { %v730_v9 = vld [vmem:[#allocation7 + $0x8] sm:$0xff]  ;;  %v729_v10 = vld [vmem:[#allocation7] sm:$0xff]  ;;  %v658_v11 = vld [vmem:[#allocation10 + $0x70] sm:$0xf] }
  0x20   :  { %567 = vmatmul.msk.bf16.vlgmr.msra.gmra.mxu0 %vm138_vm0, %v125_v3  ;;  %v752_v12 = vld [vmem:[#allocation10 + $0x74] sm:$0xf0]  ;;  %v751_v13 = vld [vmem:[#allocation10 + $0x74] sm:$0xf]  ;;  %v660_v15 = vld [vmem:[#allocation10 + $0x78] sm:$0xf0] }
  0x21   :  { %v659_v14 = vor.u32 %v752_v12, %v658_v11  ;;  %v650_v16 = vld [vmem:[#allocation10 + $0x60] sm:$0xf]  ;;  %v750_v17 = vld [vmem:[#allocation10 + $0x64] sm:$0xf0]  ;;  %v663_v18 = vor.u32 %v751_v13, %v660_v15  ;;  %v749_v19 = vld [vmem:[#allocation10 + $0x64] sm:$0xf] }
  0x22   :  { %226 = vmatpush.bf16.msra.mxu1 %v735_v4  ;;  %v652_v20 = vld [vmem:[#allocation10 + $0x68] sm:$0xf0]  ;;  %v651_v21 = vor.u32 %v750_v17, %v650_v16  ;;  %v642_v23 = vld [vmem:[#allocation10 + $0x50] sm:$0xf]  ;;  %v748_v24 = vld [vmem:[#allocation10 + $0x54] sm:$0xf0] }
  0x23   :  { %342 = vmatpush.bf16.msra.mxu2 %v659_v14  ;;  %355 = vmatpush.bf16.msra.mxu3 %v663_v18  ;;  %v655_v22 = vor.u32 %v749_v19, %v652_v20  ;;  %v747_v25 = vld [vmem:[#allocation10 + $0x54] sm:$0xf]  ;;  %v644_v26 = vld [vmem:[#allocation10 + $0x58] sm:$0xf0]  ;;  %v643_v27 = vor.u32 %v748_v24, %v642_v23  ;;  %v634_v29 = vld [vmem:[#allocation10 + $0x40] sm:$0xf] }
  0x24   :  { %v647_v28 = vor.u32 %v747_v25, %v644_v26  ;;  %v746_v30 = vld [vmem:[#allocation10 + $0x44] sm:$0xf0]  ;;  %v745_v31 = vld [vmem:[#allocation10 + $0x44] sm:$0xf]  ;;  %v636_v32 = vld [vmem:[#allocation10 + $0x48] sm:$0xf0] }
  0x25   :  { %v635_v33 = vor.u32 %v746_v30, %v634_v29  ;;  %v639_v34 = vor.u32 %v745_v31, %v636_v32  ;;  %v626_v35 = vld [vmem:[#allocation10 + $0x30] sm:$0xf]  ;;  %v744_v36 = vld [vmem:[#allocation10 + $0x34] sm:$0xf0]  ;;  %v743_v37 = vld [vmem:[#allocation10 + $0x34] sm:$0xf] }
  0x26   :  { %227 = vmatpush.bf16.msra.mxu1 %v734_v5  ;;  %v628_v38 = vld [vmem:[#allocation10 + $0x38] sm:$0xf0]  ;;  %v627_v39 = vor.u32 %v744_v36, %v626_v35  ;;  %v618_v41 = vld [vmem:[#allocation10 + $0x20] sm:$0xf]  ;;  %v742_v42 = vld [vmem:[#allocation10 + $0x24] sm:$0xf0] }
  0x27   :  { %343 = vmatpush.bf16.msra.mxu2 %v651_v21  ;;  %356 = vmatpush.bf16.msra.mxu3 %v655_v22  ;;  %v631_v40 = vor.u32 %v743_v37, %v628_v38  ;;  %v741_v43 = vld [vmem:[#allocation10 + $0x24] sm:$0xf]  ;;  %v620_v44 = vld [vmem:[#allocation10 + $0x28] sm:$0xf0]  ;;  %v619_v45 = vor.u32 %v742_v42, %v618_v41  ;;  %v610_v53 = vld [vmem:[#allocation10 + $0x10] sm:$0xf] }
  0x28   :  { %v623_v46 = vor.u32 %v741_v43, %v620_v44  ;;  %v782_v47 = vld [vmem:[%s1066_s2] ss:$0 sm:$0xff]  ;;  %v740_v54 = vld [vmem:[#allocation10 + $0x14] sm:$0xf0]  ;;  %v739_v55 = vld [vmem:[#allocation10 + $0x14] sm:$0xf] }
  0x29   :  { %v611_v56 = vor.u32 %v740_v54, %v610_v53  ;;  %v612_v57 = vld [vmem:[#allocation10 + $0x18] sm:$0xf0]  ;;  %v602_v59 = vld [vmem:[#allocation10] sm:$0xf]  ;;  %v738_v60 = vld [vmem:[#allocation10 + $0x4] sm:$0xf0] }
  0x2a   :  { %228 = vmatpush.bf16.msra.mxu1 %v733_v6  ;;  %v615_v58 = vor.u32 %v739_v55, %v612_v57  ;;  %v737_v61 = vld [vmem:[#allocation10 + $0x4] sm:$0xf]  ;;  %v603_v62 = vor.u32 %v738_v60, %v602_v59  ;;  %v604_v63 = vld [vmem:[#allocation10 + $0x8] sm:$0xf0]  ;;  %v760_v1 = vld [vmem:[#allocation11 + $0x38] sm:$0xff]  ;;  %v973_v43 = vmov 4  }
  0x2b   :  { %344 = vmatpush.bf16.msra.mxu2 %v643_v27  ;;  %357 = vmatpush.bf16.msra.mxu3 %v647_v28  ;;  %v607_v0 = vor.u32 %v737_v61, %v604_v63  ;;  %v768_v2 = vld [vmem:[#allocation11 + $0x78] sm:$0xff]  ;;  %v759_v3 = vld [vmem:[#allocation11 + $0x30] sm:$0xff]  ;;  %v758_v5 = vld [vmem:[#allocation11 + $0x28] sm:$0xff] }
  0x2c   :  { %504 = vmatpush.bf16.msrb.mxu0 %v760_v1  ;;  %v767_v4 = vld [vmem:[#allocation11 + $0x70] sm:$0xff]  ;;  %v766_v6 = vld [vmem:[#allocation11 + $0x68] sm:$0xff]  ;;  %v783_v13 = vld [vmem:[#allocation8] ss:$0 sm:$0xff]  ;;  %781 = vset.pattern.permute.xlu0 %v973_v43 }
  0x2d   :  { %v755_v11 = vld [vmem:[#allocation11 + $0x10] sm:$0xff]  ;;  %v754_v19 = vld [vmem:[#allocation11 + $0x8] sm:$0xff]  ;;  %v753_v21 = vld [vmem:[#allocation11] sm:$0xff] }
  0x2e   :  { %229 = vmatpush.bf16.msra.mxu1 %v732_v7  ;;  %v757_v7 = vld [vmem:[#allocation11 + $0x20] sm:$0xff]  ;;  %v763_v12 = vld [vmem:[#allocation11 + $0x50] sm:$0xff]  ;;  %v762_v20 = vld [vmem:[#allocation11 + $0x48] sm:$0xff] }
  0x2f   :  { %345 = vmatpush.bf16.msra.mxu2 %v635_v33  ;;  %358 = vmatpush.bf16.msra.mxu3 %v639_v34  ;;  %v761_v22 = vld [vmem:[#allocation11 + $0x40] sm:$0xff]  ;;  %v256_v23 = vld [vmem:[%s1070_s6] sm:$0x3]  ;;  %s974_s6 = smov [#allocation13]  }
  0x30   :  { %505 = vmatpush.bf16.msrb.mxu0 %v759_v3  ;;  %v258_v24 = vperm.slane %v256_v23, 0  ;;  %v259_v25 = vperm.slane %v256_v23, 1  ;;  %v784_v36 = vld [vmem:[%s1072_s8] ss:$0 sm:$0xff]  ;;  %s548_s21 = sshll.u32 %s974_s6, 4  ;;  %s550_s8 = sshll.u32 %s1073_s9, 4  ;;  %s549_s21 = int_to_ptr.vmem [resolvable:$true] %s548_s21  ;;  %s551_s8 = int_to_ptr.hbm [resolvable:$true] %s550_s8 }
  0x32   :  { %230 = vmatpush.bf16.msra.mxu1 %v731_v8  ;;  %v765_v8 = vld [vmem:[#allocation11 + $0x60] sm:$0xff] }
  0x33   :  { %346 = vmatpush.bf16.msra.mxu2 %v627_v39  ;;  %359 = vmatpush.bf16.msra.mxu3 %v631_v40 }
  0x34   :  { %506 = vmatpush.bf16.msrb.mxu0 %v758_v5 }
  0x36   :  { %231 = vmatpush.bf16.msra.mxu1 %v730_v9  ;;  %v756_v9 = vld [vmem:[#allocation11 + $0x18] sm:$0xff] }
  0x37   :  { %347 = vmatpush.bf16.msra.mxu2 %v619_v45  ;;  %360 = vmatpush.bf16.msra.mxu3 %v623_v46 }
  0x38   :  { %507 = vmatpush.bf16.msrb.mxu0 %v757_v7 }
  0x3a   :  { %232 = vmatpush.bf16.msra.mxu1 %v729_v10  ;;  %v764_v10 = vld [vmem:[#allocation11 + $0x58] sm:$0xff] }
  0x3b   :  { %348 = vmatpush.bf16.msra.mxu2 %v611_v56  ;;  %361 = vmatpush.bf16.msra.mxu3 %v615_v58 }
  0x3c   :  { %508 = vmatpush.bf16.msrb.mxu0 %v756_v9 }
  0x3e   :  { %517 = vmatpush.bf16.msrb.mxu1 %v768_v2 }
  0x3f   :  { %349 = vmatpush.bf16.msra.mxu2 %v603_v62  ;;  %362 = vmatpush.bf16.msra.mxu3 %v607_v0 }
  0x40   :  { %509 = vmatpush.bf16.msrb.mxu0 %v755_v11 }
  0x42   :  { %518 = vmatpush.bf16.msrb.mxu1 %v767_v4 }
  0x44   :  { %510 = vmatpush.bf16.msrb.mxu0 %v754_v19 }
  0x46   :  { %519 = vmatpush.bf16.msrb.mxu1 %v766_v6 }
  0x48   :  { %511 = vmatpush.bf16.msrb.mxu0 %v753_v21 }
  0x4a   :  { %520 = vmatpush.bf16.msrb.mxu1 %v765_v8 }
  0x4e   :  { %521 = vmatpush.bf16.msrb.mxu1 %v764_v10 }
  0x52   :  { %522 = vmatpush.bf16.msrb.mxu1 %v763_v12 }
  0x56   :  { %523 = vmatpush.bf16.msrb.mxu1 %v762_v20 }
  0x5a   :  { %524 = vmatpush.bf16.msrb.mxu1 %v761_v22 }
  0x9d   :  { %v151_v48 = vpop.f32.mrf.mxu0 }
  0x9e   :  { %v152_v49 = vadd.f32 %v782_v47, %v151_v48 }
  0xa0   :  { %v155_v50 = vmax.f32 %v152_v49, 0.0 }
  0xa2   :  { %v156_v51 = vpack.c.bf16 %v155_v50, %v155_v50 }
  0xa4   :  { %233 = vmatmul.bf16.vlgmr.msra.gmra.mxu1 %v156_v51 }
  0xa5   :  { %v153_v52 = vpop.f32.mrf.mxu0 }
 0x121   :  { %v234_v14 = vpop.f32.mrf.mxu1 }
 0x122   :  { %v235_v15 = vadd.f32 %v783_v13, %v234_v14 }
 0x124   :  { %v238_v16 = vmax.f32 %v235_v15, 0.0 }
 0x126   :  { %v239_v17 = vpack.c.bf16 %v238_v16, %v238_v16 }
 0x128   :  { %350 = vmatmul.bf16.vlgmr.msra.gmra.mxu2 %v239_v17  ;;  %363 = vmatmul.bf16.vlgmr.msra.gmra.mxu3 %v239_v17 }
 0x129   :  { %v236_v18 = vpop.f32.mrf.mxu1 }
 0x1ab   :  { %v351_v26 = vpop.f32.mrf.mxu2  ;;  %v364_v27 = vpop.f32.mrf.mxu3 }
 0x1ac   :  { %v352_v28 = vadd.f32 %v351_v26, %v258_v24  ;;  %v365_v29 = vadd.f32 %v364_v27, %v259_v25 }
 0x1ae   :  { %v368_v30 = vmax.f32 %v352_v28, 0.0  ;;  %v369_v31 = vmax.f32 %v365_v29, 0.0 }
 0x1b0   :  { %v370_v32 = vpack.c.bf16 %v368_v30, %v368_v30  ;;  %v371_v33 = vpack.c.bf16 %v369_v31, %v369_v31 }
 0x1b2   :  { %512 = vmatmul.bf16.vlgmr.msrb.gmra.mxu0 %v370_v32  ;;  %525 = vmatmul.bf16.vlgmr.msrb.gmra.mxu1 %v371_v33 }
 0x1b3   :  { %v353_v34 = vpop.f32.mrf.mxu2  ;;  %v366_v35 = vpop.f32.mrf.mxu3 }
 0x22f   :  { %v513_v37 = vpop.f32.mrf.mxu0  ;;  %v526_v38 = vpop.f32.mrf.mxu1 }
 0x230   :  { %v514_v39 = vadd.f32 %v784_v36, %v513_v37 }
 0x232   :  { %v527_v40 = vadd.f32 %v526_v38, %v514_v39 }
 0x234   :  { %530 = vadd.xlane.f32.xlu0 %v527_v40 }
 0x237   :  { %v515_v41 = vpop.f32.mrf.mxu0  ;;  %v528_v42 = vpop.f32.mrf.mxu1 }
 0x2a7   :  { %v531_v44 = vpop.xlane.xlu0 %530 }
 0x2a8   :  { %v532_v45 = vsub.f32 %v531_v44, %v527_v40 }
 0x2aa   :  { %v533_v46 = vmul.f32 0.25, %v532_v45 }
 0x2ac   :  { %v534_v47 = vsub.f32 %v527_v40, %v533_v46 }
 0x2ae   :  { %537 = vperm.xlu0 %781, %v534_v47  }
 0x320   :  { %v538_v48 = vpop.permute.xlu0 %537 }
 0x321   :  { %v540_v49 = vadd.f32 %v538_v48, %v527_v40 }
 0x323   :  { %v541_v50 = vpack.c.bf16 %v540_v49, %v540_v49 }
 0x325   :  { %542 = vst [vmem:[#allocation13] sm:$0xf] %v541_v50 }
 0x326   :  { %553 = dma.vmem_to_hbm [thread:$0]  %s549_s21, 64, %s551_s8, [#allocation4]  }
 0x327   :  { %961 = dma.done.wait [#allocation4], 64  }
 0x328   :  { %962 = vsyncadd [#allocation4], 4294967232 }
 0x329   :  { %558 = vsyncpa [#allocation3], 1 }
 0x32a   :  { %559 = vsyncpa [#allocation6], 1 }
 0x32b   :  { %560 = vsyncpa [#allocation9], 1 }
 0x32c   :  { %561 = vsyncpa [#allocation12], 1 }
 0x32d   :  { %562 = vsyncpa [#allocation4], 1 }

</bundles_post_ra>
